<compile_context>
chip_gen: v7x
topology: tpu7x:2x2x1
jax: 0.10.0
libtpu: 0.0.40
codegen_flags: <defaults>
</compile_context>

<pallas_src>
import jax
import jax.numpy as jnp
from jax.experimental import pallas as pl
from jax.experimental.pallas import tpu as pltpu


def _round_up(x, m):
    return (x + m - 1) // m * m


def _cdiv(a, b):
    return -(-a // b)


# ----------------------------------------------------------------------------
# Pallas kernels
# ----------------------------------------------------------------------------
def _conv_block_kernel(p_ref, w_ref, b_ref, scale_ref, shift_ref, o_ref):
    # p_ref:     (tm, r*K)      lane-packed im2col patch tile (bf16)
    # w_ref:     (r*K, r*Cout)  block-diagonal conv weights (bf16), VMEM-resident
    # b_ref:     (1, r*Cout)    conv bias tiled r times (f32)
    # scale_ref: (1, r*Cout)    folded eval-mode BatchNorm scale (1.0 if bn=False)
    # shift_ref: (1, r*Cout)    folded eval-mode BatchNorm shift (0.0 if bn=False)
    acc = jnp.dot(p_ref[...], w_ref[...], preferred_element_type=jnp.float32)
    y = acc + b_ref[...]
    y = jnp.where(y > 0, y, 0.2 * y)            # LeakyReLU(0.2)
    # Dropout2d(0.25): eval-mode -> identity.
    # TODO(synk): training-mode stochastic channel dropout not implemented.
    y = y * scale_ref[...] + shift_ref[...]     # eval-mode BatchNorm2d (folded)
    o_ref[...] = y.astype(o_ref.dtype)


def _tail_kernel(p_ref, w_ref, b_ref, scale_ref, shift_ref, wh_ref, seg_ref, bh_ref, o_ref):
    # Fused block4 conv (+LeakyReLU + eval-Dropout + eval-BN) and Linear + Sigmoid head.
    # p_ref:   (B*S, 576) bf16 im2col patches of block3 output
    # wh_ref:  (B*S, 128) f32 head weight in (spatial, channel) order, tiled over batch
    # seg_ref: (B, B*S)   f32 0/1 per-batch row-selection matrix
    acc = jnp.dot(p_ref[...], w_ref[...], preferred_element_type=jnp.float32)   # (B*S, 128)
    y = acc + b_ref[...]
    y = jnp.where(y > 0, y, 0.2 * y)
    y = y * scale_ref[...] + shift_ref[...]
    t = y * wh_ref[...]                                                         # (B*S, 128)
    zb = jnp.dot(seg_ref[...], t, preferred_element_type=jnp.float32)           # (B, 128)
    z = jnp.sum(zb, axis=-1, keepdims=True) + bh_ref[...]                       # (B, 1)
    o_ref[...] = 1.0 / (1.0 + jnp.exp(-z))                                      # Sigmoid


_WHOLE_VMEM = pl.BlockSpec(memory_space=pltpu.MemorySpace.VMEM)


# ----------------------------------------------------------------------------
# Wrappers
# ----------------------------------------------------------------------------
def _choose_m_tiling(m_big, tm_max=1024):
    # Tile the (lane-packed) M dimension.  Prefer >=2 grid steps so the "parallel"
    # axis feeds both TensorCores on v7x; keep tiles a multiple of 8 sublanes; the
    # ragged tail of the last block is handled by Pallas block masking (no pad/slice).
    if m_big < 16:
        return m_big, 1
    g = max(2, _cdiv(m_big, tm_max))
    if g % 2:
        g += 1
    tm = _round_up(_cdiv(m_big, g), 8)
    return tm, _cdiv(m_big, tm)


def conv_block_pallas(patches, w_big, b_big, scale_big, shift_big, *, tm_max=1024):
    M, K = patches.shape
    k_big, n_big = w_big.shape
    r = k_big // K          # output rows packed per 128-lane row
    n = n_big // r          # true Cout
    # Lane-pack r consecutive output rows into one row: free row-major HBM reshape.
    # Padding/slicing only triggers when M % r != 0 (never for standard DCGAN shapes).
    m_pad = _round_up(M, r)
    if m_pad != M:
        patches = jnp.pad(patches, ((0, m_pad - M), (0, 0)))
    m_big = m_pad // r
    p_big = patches.reshape(m_big, k_big)
    tm, g = _choose_m_tiling(m_big, tm_max)

    out_big = pl.pallas_call(
        _conv_block_kernel,
        out_shape=jax.ShapeDtypeStruct((m_big, n_big), jnp.bfloat16),
        grid_spec=pltpu.PrefetchScalarGridSpec(
            num_scalar_prefetch=0,
            grid=(g,),
            in_specs=[
                pl.BlockSpec((tm, k_big), lambda i: (i, 0)),     # streamed patch tiles
                pl.BlockSpec((k_big, n_big), lambda i: (0, 0)),  # weights: VMEM-resident
                pl.BlockSpec((1, n_big), lambda i: (0, 0)),      # bias
                pl.BlockSpec((1, n_big), lambda i: (0, 0)),      # bn scale
                pl.BlockSpec((1, n_big), lambda i: (0, 0)),      # bn shift
            ],
            out_specs=pl.BlockSpec((tm, n_big), lambda i: (i, 0)),
        ),
        compiler_params=pltpu.CompilerParams(
            dimension_semantics=("parallel",),                   # shard M across TCs (v7x)
            vmem_limit_bytes=32 * 1024 * 1024,                   # working set << 32 MiB
        ),
    )(p_big, w_big, b_big, scale_big, shift_big)

    out = out_big.reshape(m_pad, n)
    if m_pad != M:
        out = out[:M]
    return out


def tail_pallas(patches4, w4, b4, scale4, shift4, wh_tiled, seg, bh):
    # Whole-in-VMEM fused block4 + head (final feature map is a few KB).
    B = seg.shape[0]
    return pl.pallas_call(
        _tail_kernel,
        out_shape=jax.ShapeDtypeStruct((B, 1), jnp.float32),
        in_specs=[_WHOLE_VMEM] * 8,
        out_specs=_WHOLE_VMEM,
    )(patches4, w4, b4, scale4, shift4, wh_tiled, seg, bh)


# ----------------------------------------------------------------------------
# Glue: im2col for Conv2d(k=3, stride=2, pad=1), NHWC activations (bf16)
# ----------------------------------------------------------------------------
def im2col(x_nhwc, k=3, stride=2, pad=1):
    # TODO(synk): move this gather into the Pallas kernel (spatial tile + halo DMA)
    # to remove the ~2.25x im2col intermediate on the conv input path.
    B, H, W, C = x_nhwc.shape
    xp = jnp.pad(x_nhwc, ((0, 0), (pad, pad), (pad, pad), (0, 0)))
    Ho = (H + 2 * pad - k) // stride + 1
    Wo = (W + 2 * pad - k) // stride + 1
    cols = []
    for ky in range(k):
        for kx in range(k):
            cols.append(xp[:, ky:ky + stride * Ho:stride, kx:kx + stride * Wo:stride, :])
    patches = jnp.stack(cols, axis=3)               # (B, Ho, Wo, k*k, C)
    patches = patches.reshape(B * Ho * Wo, k * k * C)
    return patches, B, Ho, Wo


# ----------------------------------------------------------------------------
# Parameter construction (deterministic, PyTorch-like shapes)
# ----------------------------------------------------------------------------
def init_discriminator_params(key, img_size, channels):
    block_defs = [(channels, 16, False), (16, 32, True), (32, 64, True), (64, 128, True)]
    blocks = []
    for (cin, cout, bn) in block_defs:
        key, kw, kb, kg, kbe, km, kv = jax.random.split(key, 7)
        fan_in = cin * 9
        bound = 1.0 / jnp.sqrt(fan_in)
        w = jax.random.uniform(kw, (cout, cin, 3, 3), jnp.float32, -bound, bound)  # OIHW
        b = jax.random.uniform(kb, (cout,), jnp.float32, -bound, bound)
        # OIHW -> (kH, kW, Cin, Cout) -> (9*Cin, Cout), matching im2col column order.
        w_mat = jnp.transpose(w, (2, 3, 1, 0)).reshape(9 * cin, cout)
        if bn:
            gamma = jax.random.uniform(kg, (cout,), jnp.float32, 0.5, 1.5)
            beta = jax.random.uniform(kbe, (cout,), jnp.float32, -0.5, 0.5)
            r_mean = jax.random.uniform(km, (cout,), jnp.float32, -0.2, 0.2)
            r_var = jax.random.uniform(kv, (cout,), jnp.float32, 0.5, 1.5)
            eps = 0.8  # nn.BatchNorm2d(out_filters, 0.8) -> second positional arg is eps
            scale = gamma / jnp.sqrt(r_var + eps)
            shift = beta - r_mean * scale
        else:
            scale = jnp.ones((cout,), jnp.float32)
            shift = jnp.zeros((cout,), jnp.float32)
        # TODO(synk): training-mode BatchNorm (batch statistics) not implemented.
        # Lane-dense packing: r = 128 // Cout output rows share a 128-lane row; the
        # weight becomes block-diagonal (r*K, r*Cout).  Output HBM bytes unchanged;
        # the extra (zero) MXU flops ride in slack on a mem-bound layer.
        r = 128 // cout if 128 % cout == 0 else 1
        w_big = jnp.kron(jnp.eye(r, dtype=jnp.float32), w_mat).astype(jnp.bfloat16)
        blocks.append(dict(
            w_big=w_big,
            b_big=jnp.tile(b.reshape(1, cout), (1, r)),
            scale_big=jnp.tile(scale.reshape(1, cout), (1, r)),
            shift_big=jnp.tile(shift.reshape(1, cout), (1, r)),
        ))
    ds_size = img_size // 2 ** 4
    feat = 128 * ds_size ** 2
    key, kw, kb = jax.random.split(key, 3)
    bound = 1.0 / jnp.sqrt(feat)
    adv_w = jax.random.uniform(kw, (1, feat), jnp.float32, -bound, bound)  # NCHW-flatten order
    adv_b = jax.random.uniform(kb, (1,), jnp.float32, -bound, bound)
    # Permute the Linear weight once at init into (spatial, channel) NHWC order so the
    # head fuses into block4's epilogue without ever transposing the feature map.
    adv_w_s = jnp.transpose(adv_w.reshape(128, ds_size, ds_size),
                            (1, 2, 0)).reshape(ds_size * ds_size, 128)
    return dict(blocks=blocks, adv_w_s=adv_w_s, adv_b=adv_b.reshape(1, 1))


# ----------------------------------------------------------------------------
# Forward pass (eval-mode semantics of the PyTorch Discriminator)
# ----------------------------------------------------------------------------
def discriminator_forward(img_nchw, params):
    x = jnp.transpose(img_nchw, (0, 2, 3, 1)).astype(jnp.bfloat16)  # NCHW -> NHWC, bf16
    # Blocks 1-3: glue im2col + lane-packed Pallas conv block.
    for blk in params["blocks"][:3]:
        patches, B, Ho, Wo = im2col(x)
        y = conv_block_pallas(patches, blk["w_big"], blk["b_big"],
                              blk["scale_big"], blk["shift_big"])
        x = y.reshape(B, Ho, Wo, -1)
    # Block 4 + Linear + Sigmoid head fused into one pallas_call (tiny working set).
    patches4, B, Ho, Wo = im2col(x)
    s4 = Ho * Wo
    blk4 = params["blocks"][3]
    seg = jnp.kron(jnp.eye(B, dtype=jnp.float32), jnp.ones((1, s4), jnp.float32))  # (B, B*S)
    wh_tiled = jnp.tile(params["adv_w_s"], (B, 1))                                  # (B*S, 128)
    return tail_pallas(patches4, blk4["w_big"], blk4["b_big"], blk4["scale_big"],
                       blk4["shift_big"], wh_tiled, seg, params["adv_b"])


if __name__ == "__main__":
    IMG_SIZE, CHANNELS, BATCH = 16, 4, 2
    key = jax.random.PRNGKey(0)
    k_img, k_par = jax.random.split(key)
    img = jax.random.normal(k_img, (BATCH, CHANNELS, IMG_SIZE, IMG_SIZE), jnp.float32)
    params = init_discriminator_params(k_par, IMG_SIZE, CHANNELS)

    fwd = jax.jit(discriminator_forward)
    validity = fwd(img, params)
    jax.block_until_ready(validity)

    assert validity.shape == (BATCH, 1)
    assert bool(jnp.all(jnp.isfinite(validity)))
    assert bool(jnp.all((validity >= 0.0) & (validity <= 1.0)))
    print("KERNEL_OK")
</pallas_src>

<mosaic_0001>
module attributes {stable_mosaic.version = 11 : i64} {
  func.func @_conv_block_kernel(%arg0: i32, %arg1: memref<8x288xbf16, #tpu.memory_space<vmem>>, %arg2: memref<288x128xbf16, #tpu.memory_space<vmem>>, %arg3: memref<1x128xf32, #tpu.memory_space<vmem>>, %arg4: memref<1x128xf32, #tpu.memory_space<vmem>>, %arg5: memref<1x128xf32, #tpu.memory_space<vmem>>, %arg6: memref<8x128xbf16, #tpu.memory_space<vmem>>) attributes {dimension_semantics = [#tpu.dimension_semantics<parallel>], iteration_bounds = array<i64: 2>, scalar_prefetch = 0 : i64, scratch_operands = 0 : i64, tpu.core_type = #tpu.core_type<tc>, window_params = [{transform_indices = @transform_0, window_bounds = array<i64: 8, 288>}, {pipeline_mode = #tpu.pipeline_mode<synchronous>, transform_indices = @transform_1, window_bounds = array<i64: 288, 128>}, {pipeline_mode = #tpu.pipeline_mode<synchronous>, transform_indices = @transform_2, window_bounds = array<i64: 1, 128>}, {pipeline_mode = #tpu.pipeline_mode<synchronous>, transform_indices = @transform_3, window_bounds = array<i64: 1, 128>}, {pipeline_mode = #tpu.pipeline_mode<synchronous>, transform_indices = @transform_4, window_bounds = array<i64: 1, 128>}, {transform_indices = @transform_5, window_bounds = array<i64: 8, 128>}]} {
    %c0 = arith.constant 0 : index
    %c0_0 = arith.constant 0 : index
    %0 = vector.load %arg1[%c0, %c0_0] : memref<8x288xbf16, #tpu.memory_space<vmem>>, vector<8x288xbf16>
    %c0_1 = arith.constant 0 : index
    %c0_2 = arith.constant 0 : index
    %1 = vector.load %arg2[%c0_1, %c0_2] : memref<288x128xbf16, #tpu.memory_space<vmem>>, vector<288x128xbf16>
    %cst = arith.constant dense<0.000000e+00> : vector<8x128xf32>
    %2 = tpu.matmul %0, %1, %cst {dimension_numbers = #tpu.dot_dimension_numbers<[1], [0], [0], [1], [0, 0, 1, 1], [], []>} : vector<8x288xbf16>, vector<288x128xbf16>, vector<8x128xf32> -> vector<8x128xf32>
    %c0_3 = arith.constant 0 : index
    %c0_4 = arith.constant 0 : index
    %3 = vector.load %arg3[%c0_3, %c0_4] : memref<1x128xf32, #tpu.memory_space<vmem>>, vector<1x128xf32>
    %4 = vector.broadcast %3 : vector<1x128xf32> to vector<8x128xf32>
    %5 = arith.addf %2, %4 : vector<8x128xf32>
    %cst_5 = arith.constant 0.000000e+00 : f32
    %6 = vector.broadcast %cst_5 : f32 to vector<8x128xf32>
    %7 = arith.cmpf ogt, %5, %6 : vector<8x128xf32>
    %cst_6 = arith.constant 2.000000e-01 : f32
    %8 = vector.broadcast %cst_6 : f32 to vector<8x128xf32>
    %9 = arith.mulf %8, %5 : vector<8x128xf32>
    %10 = arith.select %7, %5, %9 : vector<8x128xi1>, vector<8x128xf32>
    %c0_7 = arith.constant 0 : index
    %c0_8 = arith.constant 0 : index
    %11 = vector.load %arg4[%c0_7, %c0_8] : memref<1x128xf32, #tpu.memory_space<vmem>>, vector<1x128xf32>
    %12 = vector.broadcast %11 : vector<1x128xf32> to vector<8x128xf32>
    %13 = arith.mulf %10, %12 : vector<8x128xf32>
    %c0_9 = arith.constant 0 : index
    %c0_10 = arith.constant 0 : index
    %14 = vector.load %arg5[%c0_9, %c0_10] : memref<1x128xf32, #tpu.memory_space<vmem>>, vector<1x128xf32>
    %15 = vector.broadcast %14 : vector<1x128xf32> to vector<8x128xf32>
    %16 = arith.addf %13, %15 : vector<8x128xf32>
    %17 = arith.truncf %16 : vector<8x128xf32> to vector<8x128xbf16>
    %c0_11 = arith.constant 0 : index
    %c0_12 = arith.constant 0 : index
    %18 = vector.load %arg6[%c0_11, %c0_12] : memref<8x128xbf16, #tpu.memory_space<vmem>>, vector<8x128xbf16>
    tpu.vector_store %arg6[%c0_11, %c0_12], %17 {strides = array<i32>} : memref<8x128xbf16, #tpu.memory_space<vmem>>, vector<8x128xbf16>,
    return
  }
  func.func @transform_0(%arg0: i32) -> (i32, i32) {
    %c0_i32 = arith.constant 0 : i32
    %c0_i32_0 = arith.constant 0 : i32
    return %arg0, %c0_i32 : i32, i32
  }
  func.func @transform_1(%arg0: i32) -> (i32, i32) {
    %c0_i32 = arith.constant 0 : i32
    %c0_i32_0 = arith.constant 0 : i32
    %c0_i32_1 = arith.constant 0 : i32
    return %c0_i32, %c0_i32_0 : i32, i32
  }
  func.func @transform_2(%arg0: i32) -> (i32, i32) {
    %c0_i32 = arith.constant 0 : i32
    %c0_i32_0 = arith.constant 0 : i32
    %c0_i32_1 = arith.constant 0 : i32
    return %c0_i32, %c0_i32_0 : i32, i32
  }
  func.func @transform_3(%arg0: i32) -> (i32, i32) {
    %c0_i32 = arith.constant 0 : i32
    %c0_i32_0 = arith.constant 0 : i32
    %c0_i32_1 = arith.constant 0 : i32
    return %c0_i32, %c0_i32_0 : i32, i32
  }
  func.func @transform_4(%arg0: i32) -> (i32, i32) {
    %c0_i32 = arith.constant 0 : i32
    %c0_i32_0 = arith.constant 0 : i32
    %c0_i32_1 = arith.constant 0 : i32
    return %c0_i32, %c0_i32_0 : i32, i32
  }
  func.func @transform_5(%arg0: i32) -> (i32, i32) {
    %c0_i32 = arith.constant 0 : i32
    %c0_i32_0 = arith.constant 0 : i32
    return %arg0, %c0_i32 : i32, i32
  }
}

module attributes {stable_mosaic.version = 11 : i64} {
  func.func @_conv_block_kernel(%arg0: i32, %arg1: memref<8x576xbf16, #tpu.memory_space<vmem>>, %arg2: memref<576x128xbf16, #tpu.memory_space<vmem>>, %arg3: memref<1x128xf32, #tpu.memory_space<vmem>>, %arg4: memref<1x128xf32, #tpu.memory_space<vmem>>, %arg5: memref<1x128xf32, #tpu.memory_space<vmem>>, %arg6: memref<8x128xbf16, #tpu.memory_space<vmem>>) attributes {dimension_semantics = [#tpu.dimension_semantics<parallel>], iteration_bounds = array<i64: 1>, scalar_prefetch = 0 : i64, scratch_operands = 0 : i64, tpu.core_type = #tpu.core_type<tc>, window_params = [{transform_indices = @transform_0, window_bounds = array<i64: 8, 576>}, {pipeline_mode = #tpu.pipeline_mode<synchronous>, transform_indices = @transform_1, window_bounds = array<i64: 576, 128>}, {pipeline_mode = #tpu.pipeline_mode<synchronous>, transform_indices = @transform_2, window_bounds = array<i64: 1, 128>}, {pipeline_mode = #tpu.pipeline_mode<synchronous>, transform_indices = @transform_3, window_bounds = array<i64: 1, 128>}, {pipeline_mode = #tpu.pipeline_mode<synchronous>, transform_indices = @transform_4, window_bounds = array<i64: 1, 128>}, {transform_indices = @transform_5, window_bounds = array<i64: 8, 128>}]} {
    %c0 = arith.constant 0 : index
    %c0_0 = arith.constant 0 : index
    %0 = vector.load %arg1[%c0, %c0_0] : memref<8x576xbf16, #tpu.memory_space<vmem>>, vector<8x576xbf16>
    %c0_1 = arith.constant 0 : index
    %c0_2 = arith.constant 0 : index
    %1 = vector.load %arg2[%c0_1, %c0_2] : memref<576x128xbf16, #tpu.memory_space<vmem>>, vector<576x128xbf16>
    %cst = arith.constant dense<0.000000e+00> : vector<8x128xf32>
    %2 = tpu.matmul %0, %1, %cst {dimension_numbers = #tpu.dot_dimension_numbers<[1], [0], [0], [1], [0, 0, 1, 1], [], []>} : vector<8x576xbf16>, vector<576x128xbf16>, vector<8x128xf32> -> vector<8x128xf32>
    %c0_3 = arith.constant 0 : index
    %c0_4 = arith.constant 0 : index
    %3 = vector.load %arg3[%c0_3, %c0_4] : memref<1x128xf32, #tpu.memory_space<vmem>>, vector<1x128xf32>
    %4 = vector.broadcast %3 : vector<1x128xf32> to vector<8x128xf32>
    %5 = arith.addf %2, %4 : vector<8x128xf32>
    %cst_5 = arith.constant 0.000000e+00 : f32
    %6 = vector.broadcast %cst_5 : f32 to vector<8x128xf32>
    %7 = arith.cmpf ogt, %5, %6 : vector<8x128xf32>
    %cst_6 = arith.constant 2.000000e-01 : f32
    %8 = vector.broadcast %cst_6 : f32 to vector<8x128xf32>
    %9 = arith.mulf %8, %5 : vector<8x128xf32>
    %10 = arith.select %7, %5, %9 : vector<8x128xi1>, vector<8x128xf32>
    %c0_7 = arith.constant 0 : index
    %c0_8 = arith.constant 0 : index
    %11 = vector.load %arg4[%c0_7, %c0_8] : memref<1x128xf32, #tpu.memory_space<vmem>>, vector<1x128xf32>
    %12 = vector.broadcast %11 : vector<1x128xf32> to vector<8x128xf32>
    %13 = arith.mulf %10, %12 : vector<8x128xf32>
    %c0_9 = arith.constant 0 : index
    %c0_10 = arith.constant 0 : index
    %14 = vector.load %arg5[%c0_9, %c0_10] : memref<1x128xf32, #tpu.memory_space<vmem>>, vector<1x128xf32>
    %15 = vector.broadcast %14 : vector<1x128xf32> to vector<8x128xf32>
    %16 = arith.addf %13, %15 : vector<8x128xf32>
    %17 = arith.truncf %16 : vector<8x128xf32> to vector<8x128xbf16>
    %c0_11 = arith.constant 0 : index
    %c0_12 = arith.constant 0 : index
    %18 = vector.load %arg6[%c0_11, %c0_12] : memref<8x128xbf16, #tpu.memory_space<vmem>>, vector<8x128xbf16>
    tpu.vector_store %arg6[%c0_11, %c0_12], %17 {strides = array<i32>} : memref<8x128xbf16, #tpu.memory_space<vmem>>, vector<8x128xbf16>,
    return
  }
  func.func @transform_0(%arg0: i32) -> (i32, i32) {
    %c0_i32 = arith.constant 0 : i32
    %c0_i32_0 = arith.constant 0 : i32
    return %arg0, %c0_i32 : i32, i32
  }
  func.func @transform_1(%arg0: i32) -> (i32, i32) {
    %c0_i32 = arith.constant 0 : i32
    %c0_i32_0 = arith.constant 0 : i32
    %c0_i32_1 = arith.constant 0 : i32
    return %c0_i32, %c0_i32_0 : i32, i32
  }
  func.func @transform_2(%arg0: i32) -> (i32, i32) {
    %c0_i32 = arith.constant 0 : i32
    %c0_i32_0 = arith.constant 0 : i32
    %c0_i32_1 = arith.constant 0 : i32
    return %c0_i32, %c0_i32_0 : i32, i32
  }
  func.func @transform_3(%arg0: i32) -> (i32, i32) {
    %c0_i32 = arith.constant 0 : i32
    %c0_i32_0 = arith.constant 0 : i32
    %c0_i32_1 = arith.constant 0 : i32
    return %c0_i32, %c0_i32_0 : i32, i32
  }
  func.func @transform_4(%arg0: i32) -> (i32, i32) {
    %c0_i32 = arith.constant 0 : i32
    %c0_i32_0 = arith.constant 0 : i32
    %c0_i32_1 = arith.constant 0 : i32
    return %c0_i32, %c0_i32_0 : i32, i32
  }
  func.func @transform_5(%arg0: i32) -> (i32, i32) {
    %c0_i32 = arith.constant 0 : i32
    %c0_i32_0 = arith.constant 0 : i32
    return %arg0, %c0_i32 : i32, i32
  }
}

module attributes {stable_mosaic.version = 11 : i64} {
  func.func @_conv_block_kernel(%arg0: i32, %arg1: memref<4x576xbf16, #tpu.memory_space<vmem>>, %arg2: memref<576x128xbf16, #tpu.memory_space<vmem>>, %arg3: memref<1x128xf32, #tpu.memory_space<vmem>>, %arg4: memref<1x128xf32, #tpu.memory_space<vmem>>, %arg5: memref<1x128xf32, #tpu.memory_space<vmem>>, %arg6: memref<4x128xbf16, #tpu.memory_space<vmem>>) attributes {dimension_semantics = [#tpu.dimension_semantics<parallel>], iteration_bounds = array<i64: 1>, scalar_prefetch = 0 : i64, scratch_operands = 0 : i64, tpu.core_type = #tpu.core_type<tc>, window_params = [{transform_indices = @transform_0, window_bounds = array<i64: 4, 576>}, {pipeline_mode = #tpu.pipeline_mode<synchronous>, transform_indices = @transform_1, window_bounds = array<i64: 576, 128>}, {pipeline_mode = #tpu.pipeline_mode<synchronous>, transform_indices = @transform_2, window_bounds = array<i64: 1, 128>}, {pipeline_mode = #tpu.pipeline_mode<synchronous>, transform_indices = @transform_3, window_bounds = array<i64: 1, 128>}, {pipeline_mode = #tpu.pipeline_mode<synchronous>, transform_indices = @transform_4, window_bounds = array<i64: 1, 128>}, {transform_indices = @transform_5, window_bounds = array<i64: 4, 128>}]} {
    %c0 = arith.constant 0 : index
    %c0_0 = arith.constant 0 : index
    %0 = vector.load %arg1[%c0, %c0_0] : memref<4x576xbf16, #tpu.memory_space<vmem>>, vector<4x576xbf16>
    %c0_1 = arith.constant 0 : index
    %c0_2 = arith.constant 0 : index
    %1 = vector.load %arg2[%c0_1, %c0_2] : memref<576x128xbf16, #tpu.memory_space<vmem>>, vector<576x128xbf16>
    %cst = arith.constant dense<0.000000e+00> : vector<4x128xf32>
    %2 = tpu.matmul %0, %1, %cst {dimension_numbers = #tpu.dot_dimension_numbers<[1], [0], [0], [1], [0, 0, 1, 1], [], []>} : vector<4x576xbf16>, vector<576x128xbf16>, vector<4x128xf32> -> vector<4x128xf32>
    %c0_3 = arith.constant 0 : index
    %c0_4 = arith.constant 0 : index
    %3 = vector.load %arg3[%c0_3, %c0_4] : memref<1x128xf32, #tpu.memory_space<vmem>>, vector<1x128xf32>
    %4 = vector.broadcast %3 : vector<1x128xf32> to vector<4x128xf32>
    %5 = arith.addf %2, %4 : vector<4x128xf32>
    %cst_5 = arith.constant 0.000000e+00 : f32
    %6 = vector.broadcast %cst_5 : f32 to vector<4x128xf32>
    %7 = arith.cmpf ogt, %5, %6 : vector<4x128xf32>
    %cst_6 = arith.constant 2.000000e-01 : f32
    %8 = vector.broadcast %cst_6 : f32 to vector<4x128xf32>
    %9 = arith.mulf %8, %5 : vector<4x128xf32>
    %10 = arith.select %7, %5, %9 : vector<4x128xi1>, vector<4x128xf32>
    %c0_7 = arith.constant 0 : index
    %c0_8 = arith.constant 0 : index
    %11 = vector.load %arg4[%c0_7, %c0_8] : memref<1x128xf32, #tpu.memory_space<vmem>>, vector<1x128xf32>
    %12 = vector.broadcast %11 : vector<1x128xf32> to vector<4x128xf32>
    %13 = arith.mulf %10, %12 : vector<4x128xf32>
    %c0_9 = arith.constant 0 : index
    %c0_10 = arith.constant 0 : index
    %14 = vector.load %arg5[%c0_9, %c0_10] : memref<1x128xf32, #tpu.memory_space<vmem>>, vector<1x128xf32>
    %15 = vector.broadcast %14 : vector<1x128xf32> to vector<4x128xf32>
    %16 = arith.addf %13, %15 : vector<4x128xf32>
    %17 = arith.truncf %16 : vector<4x128xf32> to vector<4x128xbf16>
    %c0_11 = arith.constant 0 : index
    %c0_12 = arith.constant 0 : index
    %18 = vector.load %arg6[%c0_11, %c0_12] : memref<4x128xbf16, #tpu.memory_space<vmem>>, vector<4x128xbf16>
    tpu.vector_store %arg6[%c0_11, %c0_12], %17 {strides = array<i32>} : memref<4x128xbf16, #tpu.memory_space<vmem>>, vector<4x128xbf16>,
    return
  }
  func.func @transform_0(%arg0: i32) -> (i32, i32) {
    %c0_i32 = arith.constant 0 : i32
    %c0_i32_0 = arith.constant 0 : i32
    return %arg0, %c0_i32 : i32, i32
  }
  func.func @transform_1(%arg0: i32) -> (i32, i32) {
    %c0_i32 = arith.constant 0 : i32
    %c0_i32_0 = arith.constant 0 : i32
    %c0_i32_1 = arith.constant 0 : i32
    return %c0_i32, %c0_i32_0 : i32, i32
  }
  func.func @transform_2(%arg0: i32) -> (i32, i32) {
    %c0_i32 = arith.constant 0 : i32
    %c0_i32_0 = arith.constant 0 : i32
    %c0_i32_1 = arith.constant 0 : i32
    return %c0_i32, %c0_i32_0 : i32, i32
  }
  func.func @transform_3(%arg0: i32) -> (i32, i32) {
    %c0_i32 = arith.constant 0 : i32
    %c0_i32_0 = arith.constant 0 : i32
    %c0_i32_1 = arith.constant 0 : i32
    return %c0_i32, %c0_i32_0 : i32, i32
  }
  func.func @transform_4(%arg0: i32) -> (i32, i32) {
    %c0_i32 = arith.constant 0 : i32
    %c0_i32_0 = arith.constant 0 : i32
    %c0_i32_1 = arith.constant 0 : i32
    return %c0_i32, %c0_i32_0 : i32, i32
  }
  func.func @transform_5(%arg0: i32) -> (i32, i32) {
    %c0_i32 = arith.constant 0 : i32
    %c0_i32_0 = arith.constant 0 : i32
    return %arg0, %c0_i32 : i32, i32
  }
}

module attributes {stable_mosaic.version = 11 : i64} {
  func.func @_tail_kernel(%arg0: memref<2x576xbf16, #tpu.memory_space<vmem>>, %arg1: memref<576x128xbf16, #tpu.memory_space<vmem>>, %arg2: memref<1x128xf32, #tpu.memory_space<vmem>>, %arg3: memref<1x128xf32, #tpu.memory_space<vmem>>, %arg4: memref<1x128xf32, #tpu.memory_space<vmem>>, %arg5: memref<2x128xf32, #tpu.memory_space<vmem>>, %arg6: memref<2x2xf32, #tpu.memory_space<vmem>>, %arg7: memref<1x1xf32, #tpu.memory_space<vmem>>, %arg8: memref<2x1xf32, #tpu.memory_space<vmem>>) attributes {dimension_semantics = [], scalar_prefetch = 0 : i64, scratch_operands = 0 : i64, tpu.core_type = #tpu.core_type<tc>} {
    %c0 = arith.constant 0 : index
    %c0_0 = arith.constant 0 : index
    %0 = vector.load %arg0[%c0, %c0_0] : memref<2x576xbf16, #tpu.memory_space<vmem>>, vector<2x576xbf16>
    %c0_1 = arith.constant 0 : index
    %c0_2 = arith.constant 0 : index
    %1 = vector.load %arg1[%c0_1, %c0_2] : memref<576x128xbf16, #tpu.memory_space<vmem>>, vector<576x128xbf16>
    %cst = arith.constant dense<0.000000e+00> : vector<2x128xf32>
    %2 = tpu.matmul %0, %1, %cst {dimension_numbers = #tpu.dot_dimension_numbers<[1], [0], [0], [1], [0, 0, 1, 1], [], []>} : vector<2x576xbf16>, vector<576x128xbf16>, vector<2x128xf32> -> vector<2x128xf32>
    %c0_3 = arith.constant 0 : index
    %c0_4 = arith.constant 0 : index
    %3 = vector.load %arg2[%c0_3, %c0_4] : memref<1x128xf32, #tpu.memory_space<vmem>>, vector<1x128xf32>
    %4 = vector.broadcast %3 : vector<1x128xf32> to vector<2x128xf32>
    %5 = arith.addf %2, %4 : vector<2x128xf32>
    %cst_5 = arith.constant 0.000000e+00 : f32
    %6 = vector.broadcast %cst_5 : f32 to vector<2x128xf32>
    %7 = arith.cmpf ogt, %5, %6 : vector<2x128xf32>
    %cst_6 = arith.constant 2.000000e-01 : f32
    %8 = vector.broadcast %cst_6 : f32 to vector<2x128xf32>
    %9 = arith.mulf %8, %5 : vector<2x128xf32>
    %10 = arith.select %7, %5, %9 : vector<2x128xi1>, vector<2x128xf32>
    %c0_7 = arith.constant 0 : index
    %c0_8 = arith.constant 0 : index
    %11 = vector.load %arg3[%c0_7, %c0_8] : memref<1x128xf32, #tpu.memory_space<vmem>>, vector<1x128xf32>
    %12 = vector.broadcast %11 : vector<1x128xf32> to vector<2x128xf32>
    %13 = arith.mulf %10, %12 : vector<2x128xf32>
    %c0_9 = arith.constant 0 : index
    %c0_10 = arith.constant 0 : index
    %14 = vector.load %arg4[%c0_9, %c0_10] : memref<1x128xf32, #tpu.memory_space<vmem>>, vector<1x128xf32>
    %15 = vector.broadcast %14 : vector<1x128xf32> to vector<2x128xf32>
    %16 = arith.addf %13, %15 : vector<2x128xf32>
    %c0_11 = arith.constant 0 : index
    %c0_12 = arith.constant 0 : index
    %17 = vector.load %arg5[%c0_11, %c0_12] : memref<2x128xf32, #tpu.memory_space<vmem>>, vector<2x128xf32>
    %18 = arith.mulf %16, %17 : vector<2x128xf32>
    %c0_13 = arith.constant 0 : index
    %c0_14 = arith.constant 0 : index
    %19 = vector.load %arg6[%c0_13, %c0_14] : memref<2x2xf32, #tpu.memory_space<vmem>>, vector<2x2xf32>
    %cst_15 = arith.constant dense<0.000000e+00> : vector<2x128xf32>
    %20 = tpu.matmul %19, %18, %cst_15 {dimension_numbers = #tpu.dot_dimension_numbers<[1], [0], [0], [1], [0, 0, 1, 1], [], []>} : vector<2x2xf32>, vector<2x128xf32>, vector<2x128xf32> -> vector<2x128xf32>
    %cst_16 = arith.constant dense<0.000000e+00> : vector<2xf32>
    %21 = vector.multi_reduction <add>, %20, %cst_16 [1] : vector<2x128xf32> to vector<2xf32>
    %22 = vector.shape_cast %21 : vector<2xf32> to vector<2x1xf32>
    %c0_17 = arith.constant 0 : index
    %c0_18 = arith.constant 0 : index
    %23 = vector.load %arg7[%c0_17, %c0_18] : memref<1x1xf32, #tpu.memory_space<vmem>>, vector<1x1xf32>
    %24 = vector.broadcast %23 : vector<1x1xf32> to vector<2x1xf32>
    %25 = arith.addf %22, %24 : vector<2x1xf32>
    %cst_19 = arith.constant 0.000000e+00 : f32
    %26 = vector.broadcast %cst_19 : f32 to vector<2x1xf32>
    %27 = arith.subf %26, %25 : vector<2x1xf32>
    %28 = math.exp %27 : vector<2x1xf32>
    %cst_20 = arith.constant 1.000000e+00 : f32
    %29 = vector.broadcast %cst_20 : f32 to vector<2x1xf32>
    %30 = arith.addf %29, %28 : vector<2x1xf32>
    %cst_21 = arith.constant 1.000000e+00 : f32
    %31 = vector.broadcast %cst_21 : f32 to vector<2x1xf32>
    %32 = arith.divf %31, %30 : vector<2x1xf32>
    %c0_22 = arith.constant 0 : index
    %c0_23 = arith.constant 0 : index
    %33 = vector.load %arg8[%c0_22, %c0_23] : memref<2x1xf32, #tpu.memory_space<vmem>>, vector<2x1xf32>
    tpu.vector_store %arg8[%c0_22, %c0_23], %32 {strides = array<i32>} : memref<2x1xf32, #tpu.memory_space<vmem>>, vector<2x1xf32>,
    return
  }
}

</mosaic_0001>

<bundles_post_ra>
// kernel: discriminator_forward.4
= control target key start
LH: loop header
LB: loop body
LE: loop exit
PB: predicated region body
PF: predicated region fallthrough
CT: control target
= control target key end

     0   :  { %s684_s18 = smov 0   ;;  %s768_s0 = inlined_call_operand.vmem [shape: bf16[16,288], index: 0, kind: input, shape index: {}]   ;;  %s769_s1 = inlined_call_operand.vmem [shape: bf16[288,128], index: 1, kind: input, shape index: {}]   ;;  %s770_s2 = inlined_call_operand.vmem [shape: f32[1,128], index: 2, kind: input, shape index: {}]   ;;  %s771_s3 = inlined_call_operand.vmem [shape: f32[1,128], index: 3, kind: input, shape index: {}]   ;;  %s772_s4 = inlined_call_operand.vmem [shape: f32[1,128], index: 4, kind: input, shape index: {}]   ;;  %s773_s5 = inlined_call_operand.vmem [shape: bf16[16,128], index: 5, kind: output, shape index: {}]  }
   0x1 LB: > { %s545_s19 = sadd.s32 4294967295, %s650_s18   ;;  %p549_p0 = scmp.ge.s32.totalorder %s650_s18, 1  ;;  %s650_s18 = sphi %s684_s18, %s15_s18  }
   0x2   : > { %p187_p1 = scmp.lt.s32.totalorder %s650_s18, 3 }
   0x4   : > { %p188_p2 = pnand %p549_p0, %p187_p1 }
   0x5   : > { %v623_v0 = vld [vmem:[%s769_s1 + $0x40] sm:$0xff] (!%p188_p2)   ;;  %v652_v2 = vmov (!%p188_p2), 0.0   ;;  %p214_p3 = scmp.lt.s32.totalorder (!%p188_p2), %s545_s19, 1  ;;  %v625_v3 = vld [vmem:[%s769_s1 + $0x48] sm:$0xff] (!%p188_p2)   ;;  %vm653_vm0 = vmmov (!%p188_p2), 0   ;;  %v627_v5 = vld [vmem:[%s769_s1 + $0x50] sm:$0xff] (!%p188_p2)  }
   0x6   : > { %191 = sbr.rel (%p188_p2) target bundleno = 267 (0x10b), region = 40  ;;  %v624_v1 = vld [vmem:[%s769_s1] sm:$0xff] (!%p188_p2)   ;;  %604 = vmatprep.subr.bf16.mxu1 (!%p188_p2), %v652_v2  ;;  %579 = vmatprep.subr.bf16.mxu0 (!%p188_p2), %v623_v0  ;;  %v626_v4 = vld [vmem:[%s769_s1 + $0x8] sm:$0xff] (!%p188_p2)   ;;  %v628_v6 = vld [vmem:[%s769_s1 + $0x10] sm:$0xff] (!%p188_p2)   ;;  %vm387_vm1 = vcmask (!%p188_p2), 261120  }
   0x7   : > { %580 = vmatpush3.bf16.msra.mxu0 (!%p188_p2), %v624_v1  ;;  %608 = vmatprep.mubr.msk.bf16.mxu1 (!%p188_p2), %vm653_vm0, %v652_v2  ;;  %v629_v7 = vld [vmem:[%s769_s1 + $0x58] sm:$0xff] (!%p188_p2)   ;;  %v631_v9 = vld [vmem:[%s769_s1 + $0x60] sm:$0xff] (!%p188_p2)   ;;  %v633_v12 = vld [vmem:[%s769_s1 + $0x68] sm:$0xff] (!%p188_p2)  }
   0x8   : > { %581 = vmatprep.subr.bf16.mxu0 (!%p188_p2), %v625_v3  ;;  %v630_v8 = vld [vmem:[%s769_s1 + $0x18] sm:$0xff] (!%p188_p2)   ;;  %v637_v10 = vld [vmem:[%s769_s1 + $0x80] sm:$0xff] (!%p188_p2)   ;;  %v643_v15 = vld [vmem:[%s769_s1 + $0x88] sm:$0xff] (!%p188_p2)  }
   0x9   : > { %v632_v11 = vld [vmem:[%s769_s1 + $0x20] sm:$0xff] (!%p188_p2)   ;;  %605 = vmatpush3.bf16.msra.mxu1 (!%p188_p2), %v637_v10  ;;  %v634_v16 = vld [vmem:[%s769_s1 + $0x28] sm:$0xff] (!%p188_p2)   ;;  %v635_v17 = vld [vmem:[%s769_s1 + $0x70] sm:$0xff] (!%p188_p2)  }
   0xa   : > { %606 = vmatprep.subr.bf16.mxu1 (!%p188_p2), %v652_v2  ;;  %v636_v19 = vld [vmem:[%s769_s1 + $0x30] sm:$0xff] (!%p188_p2)   ;;  %v638_v20 = vld [vmem:[%s769_s1 + $0x78] sm:$0xff] (!%p188_p2)   ;;  %v552_v29 = vld [vmem:[%s770_s2] ss:$0 sm:$0xff] (!%p188_p2) }
   0xb   : > { %582 = vmatpush3.bf16.msra.mxu0 (!%p188_p2), %v626_v4  ;;  %v639_v21 = vld [vmem:[%s769_s1 + $0x38] sm:$0xff] (!%p188_p2)   ;;  %v575_v36 = vld [vmem:[%s771_s3] ss:$0 sm:$0xff] (!%p188_p2) }
   0xc   : > { %583 = vmatprep.subr.bf16.mxu0 (!%p188_p2), %v627_v5  ;;  %v576_v38 = vld [vmem:[%s772_s4] ss:$0 sm:$0xff] (!%p188_p2) }
   0xd   : > { %s775_s19 = smov (!%p214_p3, %s545_s19), 1  ;;  %607 = vmatpush3.bf16.msra.mxu1 %v643_v15 }
   0xe   : > { %s612_s9 = smul.u32 12, %s775_s19 }
   0xf   : > { %584 = vmatpush3.bf16.msra.mxu0 %v628_v6 }
  0x10   : > { %585 = vmatprep.subr.bf16.mxu0 %v629_v7  ;;  %s218_s20 = scalar_lea.vmem %s768_s0, %s612_s9 }
  0x11   : > { %v224_v13 = vld [vmem:[%s218_s20] sm:$0xff]  ;;  %v642_v18 = vld [vmem:[%s218_s20 + $0x8] ss:$0 sps:$4 sm:$0xff]   ;;  %s551_s20 = sshll.u32 %s775_s19, 2 }
  0x12   : > { %v554_v14 = vcombine.high %v224_v13, %v224_v13  ;;  %609 = vmatmul.mubr.msk.bf16.vlgmr.msra.gmra.mrb[0].mxu1 %vm387_vm1, %v642_v18  ;;  %v553_v22 = vcombine.low %v224_v13, %v224_v13  ;;  %s222_s23 = scalar_lea.vmem %s773_s5, %s551_s20 }
  0x13   : > { %586 = vmatpush3.bf16.msra.mxu0 %v630_v8 }
  0x14   : > { %587 = vmatprep.subr.bf16.mxu0 %v631_v9  ;;  %423 = vmatprep.mubr.bf16.mxu0 %v554_v14 }
  0x17   : > { %588 = vmatpush3.bf16.msra.mxu0 %v632_v11 }
  0x18   : > { %589 = vmatprep.subr.bf16.mxu0 %v633_v12 }
  0x1b   : > { %590 = vmatpush3.bf16.msra.mxu0 %v634_v16 }
  0x1c   : > { %591 = vmatprep.subr.bf16.mxu0 %v635_v17 }
  0x1f   : > { %592 = vmatpush3.bf16.msra.mxu0 %v636_v19 }
  0x20   : > { %593 = vmatprep.subr.bf16.mxu0 %v638_v20 }
  0x23   : > { %594 = vmatpush3.bf16.msra.mxu0 %v639_v21 }
  0x26   : > { %424 = vmatmul.mubr.bf16.vlgmr.msra.gmra.mrb[0].mxu0 %v553_v22 }
  0xe5   : > { %v465_v23 = vpop.f32.mrb[0].mxu1 }
  0xe6   : > { %v610_v24 = vpop.f32.mrb[1].mxu1 }
  0xe7   : > { %v468_v25 = vpop.f32.mrb[2].mxu1 }
  0xe8   : > { %v611_v26 = vpop.f32.mrb[3].mxu1 }
  0xf9   : > { %v595_v27 = vpop.f32.mrb[0].mxu0 }
  0xfa   : > { %v596_v28 = vpop.f32.mrb[1].mxu0 }
  0xfb   : > { %v597_v30 = vadd.f32 %v596_v28, %v595_v27  ;;  %v598_v31 = vpop.f32.mrb[2].mxu0 }
  0xfc   : > { %v599_v32 = vpop.f32.mrb[3].mxu0 }
  0xfd   : > { %v426_v33 = vadd.f32 %v597_v30, %v552_v29 }
  0xff   : > { %v466_v34 = vadd.f32 %v465_v23, %v426_v33 }
 0x101   : > { %vm471_vm2 = vcmp.gt.f32.partialorder %v466_v34, 0.0  ;;  %v472_v35 = vmul.f32 0.2, %v466_v34 }
 0x103   : > { %v473_v37 = vsel %vm471_vm2, %v466_v34, %v472_v35 }
 0x104   : > { %v481_v39 = vmul.f32 %v575_v36, %v473_v37 }
 0x106   : > { %v489_v40 = vadd.f32 %v576_v38, %v481_v39 }
 0x108   : > { %v490_v41 = vpack.c.bf16 %v489_v40, %v489_v40 }
 0x10a   : > { %491 = vst [vmem:[%s222_s23] sm:$0xf] %v490_v41 }
 0x10b PF: > { %s15_s18 = sadd.s32 1, %s650_s18  }
 0x10c   : > { %p12_p4 = scmp.ge.s32.totalorder %s15_s18, 4  }
 0x10e   :  { %14 = sbr.rel (!%p12_p4) target bundleno = 1 (0x1), region = 70 }

// kernel: discriminator_forward.5
= control target key start
LH: loop header
LB: loop body
LE: loop exit
PB: predicated region body
PF: predicated region fallthrough
CT: control target
= control target key end

     0   :  { %v634_v35 = vmov 0.0   ;;  %vm635_vm0 = vmmov 0   ;;  %vm336_vm1 = vcmask 523264   ;;  %s795_s1 = inlined_call_operand.vmem [shape: bf16[576,128], index: 1, kind: input, shape index: {}]   ;;  %s796_s0 = inlined_call_operand.vmem [shape: bf16[8,576], index: 0, kind: input, shape index: {}]   ;;  %s797_s2 = inlined_call_operand.vmem [shape: f32[1,128], index: 2, kind: input, shape index: {}]   ;;  %s798_s3 = inlined_call_operand.vmem [shape: f32[1,128], index: 3, kind: input, shape index: {}]   ;;  %s799_s4 = inlined_call_operand.vmem [shape: f32[1,128], index: 4, kind: input, shape index: {}]   ;;  %s800_s5 = inlined_call_operand.vmem [shape: bf16[8,128], index: 5, kind: output, shape index: {}]  }
   0x1   :  { %v593_v0 = vld [vmem:[%s795_s1 + $0x40] sm:$0xff]   ;;  %v597_v4 = vld [vmem:[%s795_s1 + $0x48] sm:$0xff]   ;;  %v601_v8 = vld [vmem:[%s795_s1 + $0x50] sm:$0xff]  }
   0x2   :  { %v594_v1 = vld [vmem:[%s795_s1] sm:$0xff]   ;;  %530 = vmatprep.subr.bf16.mxu0 %v593_v0  ;;  %v598_v5 = vld [vmem:[%s795_s1 + $0x8] sm:$0xff]   ;;  %v602_v9 = vld [vmem:[%s795_s1 + $0x10] sm:$0xff]  }
   0x3   :  { %v595_v2 = vld [vmem:[%s795_s1 + $0xc0] sm:$0xff]   ;;  %531 = vmatpush3.bf16.msra.mxu0 %v594_v1  ;;  %v599_v6 = vld [vmem:[%s795_s1 + $0xc8] sm:$0xff]   ;;  %v603_v10 = vld [vmem:[%s795_s1 + $0xd0] sm:$0xff]  }
   0x4   :  { %v596_v3 = vld [vmem:[%s795_s1 + $0x80] sm:$0xff]   ;;  %552 = vmatprep.subr.bf16.mxu1 %v595_v2  ;;  %532 = vmatprep.subr.bf16.mxu0 %v597_v4  ;;  %v600_v7 = vld [vmem:[%s795_s1 + $0x88] sm:$0xff]   ;;  %v604_v11 = vld [vmem:[%s795_s1 + $0x90] sm:$0xff]  }
   0x5   :  { %553 = vmatpush3.bf16.msra.mxu1 %v596_v3  ;;  %v605_v12 = vld [vmem:[%s795_s1 + $0x58] sm:$0xff]   ;;  %v609_v16 = vld [vmem:[%s795_s1 + $0x60] sm:$0xff]   ;;  %v613_v20 = vld [vmem:[%s795_s1 + $0x68] sm:$0xff]  }
   0x6   :  { %554 = vmatprep.subr.bf16.mxu1 %v599_v6  ;;  %v606_v13 = vld [vmem:[%s795_s1 + $0x18] sm:$0xff]   ;;  %v610_v17 = vld [vmem:[%s795_s1 + $0x20] sm:$0xff]   ;;  %v614_v21 = vld [vmem:[%s795_s1 + $0x28] sm:$0xff]  }
   0x7   :  { %533 = vmatpush3.bf16.msra.mxu0 %v598_v5  ;;  %v607_v14 = vld [vmem:[%s795_s1 + $0xd8] sm:$0xff]   ;;  %v611_v18 = vld [vmem:[%s795_s1 + $0xe0] sm:$0xff]   ;;  %v615_v22 = vld [vmem:[%s795_s1 + $0xe8] sm:$0xff]  }
   0x8   :  { %534 = vmatprep.subr.bf16.mxu0 %v601_v8  ;;  %v608_v15 = vld [vmem:[%s795_s1 + $0x98] sm:$0xff]   ;;  %v612_v19 = vld [vmem:[%s795_s1 + $0xa0] sm:$0xff]   ;;  %v616_v23 = vld [vmem:[%s795_s1 + $0xa8] sm:$0xff]  }
   0x9   :  { %555 = vmatpush3.bf16.msra.mxu1 %v600_v7  ;;  %v617_v24 = vld [vmem:[%s795_s1 + $0x70] sm:$0xff]   ;;  %v621_v28 = vld [vmem:[%s795_s1 + $0x78] sm:$0xff]   ;;  %v21_v31 = vld [vmem:[%s796_s0] sm:$0xff] }
   0xa   :  { %556 = vmatprep.subr.bf16.mxu1 %v603_v10  ;;  %v618_v25 = vld [vmem:[%s795_s1 + $0x30] sm:$0xff]   ;;  %v622_v29 = vld [vmem:[%s795_s1 + $0x38] sm:$0xff]   ;;  %v486_v32 = vcombine.low %v21_v31, %v21_v31  ;;  %v487_v33 = vcombine.high %v21_v31, %v21_v31  ;;  %v22_v36 = vld [vmem:[%s796_s0 + $0x8] sm:$0xff] }
   0xb   :  { %535 = vmatpush3.bf16.msra.mxu0 %v602_v9  ;;  %v619_v26 = vld [vmem:[%s795_s1 + $0xf0] sm:$0xff]   ;;  %v623_v30 = vld [vmem:[%s795_s1 + $0xf8] sm:$0xff]   ;;  %v488_v37 = vcombine.low %v22_v36, %v22_v36  ;;  %v489_v38 = vcombine.high %v22_v36, %v22_v36  ;;  %v630_v39 = vld [vmem:[%s795_s1 + $0x100] sm:$0xff]  }
   0xc   :  { %536 = vmatprep.subr.bf16.mxu0 %v605_v12  ;;  %v620_v27 = vld [vmem:[%s795_s1 + $0xb0] sm:$0xff]   ;;  %v627_v34 = vld [vmem:[%s795_s1 + $0xb8] sm:$0xff]   ;;  %372 = vmatprep.mubr.bf16.mxu0 %v487_v33  ;;  %v631_v40 = vld [vmem:[%s795_s1 + $0x108] sm:$0xff]  }
   0xd   :  { %557 = vmatpush3.bf16.msra.mxu1 %v604_v11  ;;  %412 = vmatprep.mubr.bf16.mxu1 %v489_v38  ;;  %v632_v41 = vld [vmem:[%s795_s1 + $0x110] sm:$0xff]   ;;  %v633_v42 = vld [vmem:[%s795_s1 + $0x118] sm:$0xff]   ;;  %v485_v45 = vld [vmem:[%s797_s2] ss:$0 sm:$0xff] }
   0xe   :  { %558 = vmatprep.subr.bf16.mxu1 %v607_v14  ;;  %v626_v43 = vld [vmem:[%s796_s0 + $0x10] ss:$0 sps:$4 sm:$0xff]   ;;  %v528_v62 = vld [vmem:[%s798_s3] ss:$0 sm:$0xff] }
   0xf   :  { %537 = vmatpush3.bf16.msra.mxu0 %v606_v13  ;;  %v529_v1 = vld [vmem:[%s799_s4] ss:$0 sm:$0xff] }
  0x10   :  { %538 = vmatprep.subr.bf16.mxu0 %v609_v16 }
  0x11   :  { %559 = vmatpush3.bf16.msra.mxu1 %v608_v15 }
  0x12   :  { %560 = vmatprep.subr.bf16.mxu1 %v611_v18 }
  0x13   :  { %539 = vmatpush3.bf16.msra.mxu0 %v610_v17 }
  0x14   :  { %540 = vmatprep.subr.bf16.mxu0 %v613_v20 }
  0x15   :  { %561 = vmatpush3.bf16.msra.mxu1 %v612_v19 }
  0x16   :  { %562 = vmatprep.subr.bf16.mxu1 %v615_v22 }
  0x17   :  { %541 = vmatpush3.bf16.msra.mxu0 %v614_v21 }
  0x18   :  { %542 = vmatprep.subr.bf16.mxu0 %v617_v24 }
  0x19   :  { %563 = vmatpush3.bf16.msra.mxu1 %v616_v23 }
  0x1a   :  { %564 = vmatprep.subr.bf16.mxu1 %v619_v26 }
  0x1b   :  { %543 = vmatpush3.bf16.msra.mxu0 %v618_v25 }
  0x1c   :  { %544 = vmatprep.subr.bf16.mxu0 %v621_v28 }
  0x1d   :  { %565 = vmatpush3.bf16.msra.mxu1 %v620_v27 }
  0x1e   :  { %566 = vmatprep.subr.bf16.mxu1 %v623_v30 }
  0x1f   :  { %545 = vmatpush3.bf16.msra.mxu0 %v622_v29 }
  0x20   :  { %579 = vmatprep.subr.bf16.mxu0 %v634_v35 }
  0x21   :  { %567 = vmatpush3.bf16.msra.mxu1 %v627_v34 }
  0x22   :  { %373 = vmatmul.mubr.bf16.vlgmr.msra.gmra.mrb[0].mxu0 %v486_v32 }
  0x23   :  { %580 = vmatpush3.bf16.msra.mxu0 %v630_v39  ;;  %587 = vmatprep.mubr.msk.bf16.mxu0 %vm635_vm0, %v634_v35 }
  0x24   :  { %413 = vmatmul.mubr.bf16.vlgmr.msra.gmra.mrb[0].mxu1 %v488_v37  ;;  %581 = vmatprep.subr.bf16.mxu0 %v634_v35 }
  0x27   :  { %582 = vmatpush3.bf16.msra.mxu0 %v631_v40 }
  0x28   :  { %583 = vmatprep.subr.bf16.mxu0 %v634_v35 }
  0x2b   :  { %584 = vmatpush3.bf16.msra.mxu0 %v632_v41 }
  0x2c   :  { %585 = vmatprep.subr.bf16.mxu0 %v634_v35 }
  0x2f   :  { %586 = vmatpush3.bf16.msra.mxu0 %v633_v42 }
  0x32   :  { %588 = vmatmul.mubr.msk.bf16.vlgmr.msra.gmra.mrb[4].mxu0 %vm336_vm1, %v626_v43 }
  0xf5   :  { %v546_v44 = vpop.f32.mrb[0].mxu0 }
  0xf6   :  { %v547_v46 = vpop.f32.mrb[1].mxu0 }
  0xf7   :  { %v548_v47 = vadd.f32 %v547_v46, %v546_v44  ;;  %v549_v48 = vpop.f32.mrb[2].mxu0  ;;  %v568_v49 = vpop.f32.mrb[0].mxu1 }
  0xf8   :  { %v550_v50 = vpop.f32.mrb[3].mxu0  ;;  %v569_v51 = vpop.f32.mrb[1].mxu1 }
  0xf9   :  { %v375_v52 = vadd.f32 %v548_v47, %v485_v45  ;;  %v570_v53 = vadd.f32 %v569_v51, %v568_v49  ;;  %v571_v54 = vpop.f32.mrb[2].mxu1 }
  0xfa   :  { %v572_v55 = vpop.f32.mrb[3].mxu1 }
  0xfb   :  { %v415_v56 = vadd.f32 %v570_v53, %v375_v52 }
 0x105   :  { %v454_v57 = vpop.f32.mrb[4].mxu0 }
 0x106   :  { %v455_v58 = vadd.f32 %v454_v57, %v415_v56  ;;  %v589_v59 = vpop.f32.mrb[5].mxu0 }
 0x107   :  { %v457_v60 = vpop.f32.mrb[6].mxu0 }
 0x108   :  { %vm460_vm2 = vcmp.gt.f32.partialorder %v455_v58, 0.0  ;;  %v461_v61 = vmul.f32 0.2, %v455_v58  ;;  %v590_v63 = vpop.f32.mrb[7].mxu0 }
 0x10a   :  { %v462_v0 = vsel %vm460_vm2, %v455_v58, %v461_v61 }
 0x10b   :  { %v470_v2 = vmul.f32 %v528_v62, %v462_v0 }
 0x10d   :  { %v478_v3 = vadd.f32 %v529_v1, %v470_v2 }
 0x10f   :  { %v479_v4 = vpack.c.bf16 %v478_v3, %v478_v3 }
 0x111   :  { %480 = vst [vmem:[%s800_s5] sm:$0xf] %v479_v4 }

// kernel: discriminator_forward.7
= control target key start
LH: loop header
LB: loop body
LE: loop exit
PB: predicated region body
PF: predicated region fallthrough
CT: control target
= control target key end

     0   :  { %v774_v21 = vmov 1966171168   ;;  %v117_v23 = vlaneseq  ;;  %v775_v40 = vmov 0.0   ;;  %vm776_vm0 = vmmov 0   ;;  %s954_s1 = inlined_call_operand.vmem [shape: bf16[576,128], index: 1, kind: input, shape index: {}]   ;;  %s955_s0 = inlined_call_operand.vmem [shape: bf16[2,576], index: 0, kind: input, shape index: {}]   ;;  %s956_s2 = inlined_call_operand.vmem [shape: f32[1,128], index: 2, kind: input, shape index: {}]   ;;  %s957_s3 = inlined_call_operand.vmem [shape: f32[1,128], index: 3, kind: input, shape index: {}]   ;;  %s958_s4 = inlined_call_operand.vmem [shape: f32[1,128], index: 4, kind: input, shape index: {}]   ;;  %s959_s5 = inlined_call_operand.vmem [shape: f32[2,128], index: 5, kind: input, shape index: {}]   ;;  %s960_s6 = inlined_call_operand.vmem [shape: f32[2,2], index: 6, kind: input, shape index: {}]   ;;  %s961_s7 = inlined_call_operand.<no memory space> [shape: f32[1,1], index: 7, kind: input, shape index: {}]   ;;  %s962_s8 = inlined_call_operand.vmem [shape: f32[2,1], index: 8, kind: output, shape index: {}]  }
   0x1   :  { %v733_v0 = vld [vmem:[%s954_s1 + $0x40] sm:$0xff]   ;;  %v737_v4 = vld [vmem:[%s954_s1 + $0x48] sm:$0xff]   ;;  %v741_v8 = vld [vmem:[%s954_s1 + $0x50] sm:$0xff]   ;;  %v115_v22 = vunpack.c.l.s4 %v774_v21  ;;  %vm372_vm1 = vcmask 523264   ;;  %vm522_vm3 = vcmask 1041408   ;;  %vm518_vm4 = vcmask 15360  }
   0x2   :  { %v734_v1 = vld [vmem:[%s954_s1] sm:$0xff]   ;;  %662 = vmatprep.subr.bf16.mxu0 %v733_v0  ;;  %v738_v5 = vld [vmem:[%s954_s1 + $0x8] sm:$0xff]   ;;  %v742_v9 = vld [vmem:[%s954_s1 + $0x10] sm:$0xff]   ;;  %v118_v29 = vshrl.u32 %v117_v23, 7  ;;  %vm613_vm5 = vcmask 1024  }
   0x3   :  { %v735_v2 = vld [vmem:[%s954_s1 + $0xc0] sm:$0xff]   ;;  %663 = vmatpush3.bf16.msra.mxu0 %v734_v1  ;;  %v739_v6 = vld [vmem:[%s954_s1 + $0xc8] sm:$0xff]   ;;  %v743_v10 = vld [vmem:[%s954_s1 + $0xd0] sm:$0xff]   ;;  %v116_v28 = vunpack.c.0.s8 %v115_v22 }
   0x4   :  { %v736_v3 = vld [vmem:[%s954_s1 + $0x80] sm:$0xff]   ;;  %684 = vmatprep.subr.bf16.mxu1 %v735_v2  ;;  %664 = vmatprep.subr.bf16.mxu0 %v737_v4  ;;  %v740_v7 = vld [vmem:[%s954_s1 + $0x88] sm:$0xff]   ;;  %v744_v11 = vld [vmem:[%s954_s1 + $0x90] sm:$0xff]  }
   0x5   :  { %685 = vmatpush3.bf16.msra.mxu1 %v736_v3  ;;  %v745_v12 = vld [vmem:[%s954_s1 + $0x58] sm:$0xff]   ;;  %v749_v16 = vld [vmem:[%s954_s1 + $0x60] sm:$0xff]   ;;  %v753_v20 = vld [vmem:[%s954_s1 + $0x68] sm:$0xff]   ;;  %v119_v34 = vsub.s32 %v116_v28, %v118_v29 }
   0x6   :  { %686 = vmatprep.subr.bf16.mxu1 %v739_v6  ;;  %v746_v13 = vld [vmem:[%s954_s1 + $0x18] sm:$0xff]   ;;  %v750_v17 = vld [vmem:[%s954_s1 + $0x20] sm:$0xff]   ;;  %v754_v24 = vld [vmem:[%s954_s1 + $0x28] sm:$0xff]  }
   0x7   :  { %665 = vmatpush3.bf16.msra.mxu0 %v738_v5  ;;  %v747_v14 = vld [vmem:[%s954_s1 + $0xd8] sm:$0xff]   ;;  %v751_v18 = vld [vmem:[%s954_s1 + $0xe0] sm:$0xff]   ;;  %v755_v25 = vld [vmem:[%s954_s1 + $0xe8] sm:$0xff]  }
   0x8   :  { %666 = vmatprep.subr.bf16.mxu0 %v741_v8  ;;  %v748_v15 = vld [vmem:[%s954_s1 + $0x98] sm:$0xff]   ;;  %v752_v19 = vld [vmem:[%s954_s1 + $0xa0] sm:$0xff]   ;;  %v756_v26 = vld [vmem:[%s954_s1 + $0xa8] sm:$0xff]  }
   0x9   :  { %687 = vmatpush3.bf16.msra.mxu1 %v740_v7  ;;  %v757_v27 = vld [vmem:[%s954_s1 + $0x70] sm:$0xff]   ;;  %v761_v33 = vld [vmem:[%s954_s1 + $0x78] sm:$0xff]   ;;  %v32_v37 = vld [vmem:[%s955_s0] sm:$0x1f] }
   0xa   :  { %688 = vmatprep.subr.bf16.mxu1 %v743_v10  ;;  %v758_v30 = vld [vmem:[%s954_s1 + $0x30] sm:$0xff]   ;;  %v762_v35 = vld [vmem:[%s954_s1 + $0x38] sm:$0xff]   ;;  %v120_v38 = vrot.slane %v32_v37, %v119_v34  ;;  %v766_v44 = vld [vmem:[%s954_s1 + $0x100] sm:$0xff]   ;;  %v113_v48 = vcombine.high %v32_v37, %v32_v37 }
   0xb   :  { %667 = vmatpush3.bf16.msra.mxu0 %v742_v9  ;;  %v759_v31 = vld [vmem:[%s954_s1 + $0xf0] sm:$0xff]   ;;  %v763_v36 = vld [vmem:[%s954_s1 + $0xf8] sm:$0xff]   ;;  %v767_v47 = vld [vmem:[%s954_s1 + $0x108] sm:$0xff]  }
   0xc   :  { %668 = vmatprep.subr.bf16.mxu0 %v745_v12  ;;  %v760_v32 = vld [vmem:[%s954_s1 + $0xb0] sm:$0xff]   ;;  %v765_v39 = vld [vmem:[%s954_s1 + $0xb8] sm:$0xff]   ;;  %v128_v41 = vcombine.high %v120_v38, %v120_v38  ;;  %v135_v42 = vrot.slane %v120_v38, %v119_v34  ;;  %v127_v50 = vrot.slane %v113_v48, %v119_v34  ;;  %v619_v54 = vld [vmem:[%s956_s2] ss:$0 sm:$0xff] }
   0xd   :  { %689 = vmatpush3.bf16.msra.mxu1 %v744_v11  ;;  %v768_v49 = vld [vmem:[%s954_s1 + $0x110] sm:$0xff]   ;;  %v769_v51 = vld [vmem:[%s954_s1 + $0x118] sm:$0xff]   ;;  %v657_v7 = vld [vmem:[%s957_s3] ss:$0 sm:$0xff] }
   0xe   :  { %690 = vmatprep.subr.bf16.mxu1 %v747_v14  ;;  %v149_v43 = vrot.slane %v128_v41, %v119_v34  ;;  %v150_v45 = vcombine.high %v135_v42, %v135_v42  ;;  %v142_v52 = vrot.slane %v127_v50, %v119_v34  ;;  %v658_v10 = vld [vmem:[%s958_s4] ss:$0 sm:$0xff] }
   0xf   :  { %669 = vmatpush3.bf16.msra.mxu0 %v746_v13  ;;  %v515_v12 = vld [vmem:[%s959_s5] sm:$0x3] }
  0x10   :  { %670 = vmatprep.subr.bf16.mxu0 %v749_v16  ;;  %408 = vmatprep.mubr.bf16.mxu0 %v149_v43  ;;  %v151_v46 = vcombine.high %v149_v43, %v149_v43  ;;  %v13_v16 = vstv %s961_s7 }
  0x11   :  { %691 = vmatpush3.bf16.msra.mxu1 %v748_v15  ;;  %v517_v15 = vld [vmem:[%s960_s6] sm:$0x3]  ;;  %14 = vst [vmem:[#allocation2] sm:$0x1] %v13_v16 }
  0x12   :  { %692 = vmatprep.subr.bf16.mxu1 %v751_v18  ;;  %448 = vmatprep.mubr.bf16.mxu1 %v151_v46 }
  0x13   :  { %671 = vmatpush3.bf16.msra.mxu0 %v750_v17 }
  0x14   :  { %672 = vmatprep.subr.bf16.mxu0 %v753_v20 }
  0x15   :  { %693 = vmatpush3.bf16.msra.mxu1 %v752_v19 }
  0x16   :  { %694 = vmatprep.subr.bf16.mxu1 %v755_v25 }
  0x17   :  { %673 = vmatpush3.bf16.msra.mxu0 %v754_v24 }
  0x18   :  { %674 = vmatprep.subr.bf16.mxu0 %v757_v27  ;;  %v661_v20 = vld [vmem:[#allocation2] ss:$0 sm:$0xff] }
  0x19   :  { %695 = vmatpush3.bf16.msra.mxu1 %v756_v26 }
  0x1a   :  { %696 = vmatprep.subr.bf16.mxu1 %v759_v31 }
  0x1b   :  { %675 = vmatpush3.bf16.msra.mxu0 %v758_v30 }
  0x1c   :  { %676 = vmatprep.subr.bf16.mxu0 %v761_v33 }
  0x1d   :  { %697 = vmatpush3.bf16.msra.mxu1 %v760_v32 }
  0x1e   :  { %698 = vmatprep.subr.bf16.mxu1 %v763_v36 }
  0x1f   :  { %677 = vmatpush3.bf16.msra.mxu0 %v762_v35 }
  0x20   :  { %713 = vmatprep.subr.bf16.mxu0 %v775_v40 }
  0x21   :  { %699 = vmatpush3.bf16.msra.mxu1 %v765_v39 }
  0x22   :  { %725 = vmatprep.subr.mxu1 %v775_v40  ;;  %409 = vmatmul.mubr.bf16.vlgmr.msra.gmra.mrb[0].mxu0 %v135_v42 }
  0x23   :  { %714 = vmatpush3.bf16.msra.mxu0 %v766_v44  ;;  %721 = vmatprep.mubr.msk.bf16.mxu0 %vm776_vm0, %v775_v40 }
  0x24   :  { %449 = vmatmul.mubr.bf16.vlgmr.msra.gmra.mrb[0].mxu1 %v150_v45  ;;  %715 = vmatprep.subr.bf16.mxu0 %v775_v40 }
  0x25   :  { %727 = vmatprep.mubr.msk.f32.mxu1 %vm776_vm0, %v775_v40 }
  0x27   :  { %716 = vmatpush3.bf16.msra.mxu0 %v767_v47 }
  0x28   :  { %717 = vmatprep.subr.bf16.mxu0 %v775_v40 }
  0x2b   :  { %718 = vmatpush3.bf16.msra.mxu0 %v768_v49 }
  0x2c   :  { %719 = vmatprep.subr.bf16.mxu0 %v775_v40 }
  0x2f   :  { %720 = vmatpush3.bf16.msra.mxu0 %v769_v51 }
  0x32   :  { %722 = vmatmul.mubr.msk.bf16.vlgmr.msra.gmra.mrb[4].mxu0 %vm372_vm1, %v142_v52 }
  0xf5   :  { %v678_v53 = vpop.f32.mrb[0].mxu0 }
  0xf6   :  { %v679_v55 = vpop.f32.mrb[1].mxu0 }
  0xf7   :  { %v680_v56 = vadd.f32 %v679_v55, %v678_v53  ;;  %v681_v57 = vpop.f32.mrb[2].mxu0  ;;  %v700_v58 = vpop.f32.mrb[0].mxu1 }
  0xf8   :  { %v682_v59 = vpop.f32.mrb[3].mxu0  ;;  %v701_v60 = vpop.f32.mrb[1].mxu1 }
  0xf9   :  { %v411_v61 = vadd.f32 %v680_v56, %v619_v54  ;;  %v702_v62 = vadd.f32 %v701_v60, %v700_v58  ;;  %v703_v63 = vpop.f32.mrb[2].mxu1 }
  0xfa   :  { %v704_v0 = vpop.f32.mrb[3].mxu1 }
  0xfb   :  { %v451_v1 = vadd.f32 %v702_v62, %v411_v61 }
 0x105   :  { %v490_v2 = vpop.f32.mrb[4].mxu0 }
 0x106   :  { %v491_v3 = vadd.f32 %v490_v2, %v451_v1  ;;  %v723_v4 = vpop.f32.mrb[5].mxu0 }
 0x107   :  { %v493_v5 = vpop.f32.mrb[6].mxu0 }
 0x108   :  { %vm496_vm2 = vcmp.gt.f32.partialorder %v491_v3, 0.0  ;;  %v497_v6 = vmul.f32 0.2, %v491_v3  ;;  %v724_v8 = vpop.f32.mrb[7].mxu0 }
 0x10a   :  { %v498_v9 = vsel %vm496_vm2, %v491_v3, %v497_v6 }
 0x10b   :  { %v506_v11 = vmul.f32 %v657_v7, %v498_v9 }
 0x10d   :  { %v514_v13 = vadd.f32 %v658_v10, %v506_v11 }
 0x10f   :  { %v516_v14 = vmul.f32 %v515_v12, %v514_v13 }
 0x111   :  { %726 = vmatpush3.msk.msra.mxu1 %vm522_vm3, %v516_v14 }
 0x112   :  { %728 = vmatmul.mubr.msk.f32.vlgmr.msra.gmra.mrb[4].mxu1 %vm518_vm4, %v517_v15 }
 0x1e5   :  { %v592_v17 = vpop.f32.mrb[4].mxu1 }
 0x1e6   :  { %v729_v18 = vpop.f32.mrb[5].mxu1  ;;  %v596_v19 = vsel %vm522_vm3, %v592_v17, 0.0 }
 0x1e7   :  { %597 = vadd.xlane.f32.xlu0 %v596_v19 }
 0x274   :  { %v598_v21 = vpop.xlane.xlu0 %597 }
 0x275   :  { %v606_v22 = vadd.f32 %v661_v20, %v598_v21 }
 0x277   :  { %v607_v23 = vsub.f32 0.0, %v606_v22 }
 0x279   :  { %v608_v24 = vmul.f32 1.442695, %v607_v23 }
 0x27b   :  { %770 = vpow2.f32 %v608_v24 }
 0x285   :  { %v771_v25 = vpop.eup %770 }
 0x286   :  { %v610_v26 = vadd.f32 1.0, %v771_v25 }
 0x288   :  { %772 = vrcp.f32 %v610_v26 }
 0x292   :  { %v773_v27 = vpop.eup %772 }
 0x293   :  { %614 = vst.msk [vmem:[%s962_s8] sm:$0x3] %vm613_vm5, %v773_v27 }

// kernel: discriminator_forward.6
= control target key start
LH: loop header
LB: loop body
LE: loop exit
PB: predicated region body
PF: predicated region fallthrough
CT: control target
= control target key end

     0   :  { %v639_v21 = vmov 1983009808   ;;  %v108_v23 = vlaneseq  ;;  %v640_v40 = vmov 0.0   ;;  %vm641_vm0 = vmmov 0   ;;  %s798_s1 = inlined_call_operand.vmem [shape: bf16[576,128], index: 1, kind: input, shape index: {}]   ;;  %s799_s0 = inlined_call_operand.vmem [shape: bf16[4,576], index: 0, kind: input, shape index: {}]   ;;  %s800_s2 = inlined_call_operand.vmem [shape: f32[1,128], index: 2, kind: input, shape index: {}]   ;;  %s801_s3 = inlined_call_operand.vmem [shape: f32[1,128], index: 3, kind: input, shape index: {}]   ;;  %s802_s4 = inlined_call_operand.vmem [shape: f32[1,128], index: 4, kind: input, shape index: {}]   ;;  %s803_s5 = inlined_call_operand.vmem [shape: bf16[4,128], index: 5, kind: output, shape index: {}]  }
   0x1   :  { %v602_v0 = vld [vmem:[%s798_s1 + $0x40] sm:$0xff]   ;;  %v606_v4 = vld [vmem:[%s798_s1 + $0x48] sm:$0xff]   ;;  %v610_v8 = vld [vmem:[%s798_s1 + $0x50] sm:$0xff]   ;;  %v106_v22 = vunpack.c.l.s4 %v639_v21  ;;  %vm348_vm1 = vcmask 523264  }
   0x2   :  { %v603_v1 = vld [vmem:[%s798_s1] sm:$0xff]   ;;  %538 = vmatprep.subr.bf16.mxu0 %v602_v0  ;;  %v607_v5 = vld [vmem:[%s798_s1 + $0x8] sm:$0xff]   ;;  %v611_v9 = vld [vmem:[%s798_s1 + $0x10] sm:$0xff]   ;;  %v109_v29 = vshrl.u32 %v108_v23, 7 }
   0x3   :  { %v604_v2 = vld [vmem:[%s798_s1 + $0xc0] sm:$0xff]   ;;  %539 = vmatpush3.bf16.msra.mxu0 %v603_v1  ;;  %v608_v6 = vld [vmem:[%s798_s1 + $0xc8] sm:$0xff]   ;;  %v612_v10 = vld [vmem:[%s798_s1 + $0xd0] sm:$0xff]   ;;  %v107_v28 = vunpack.c.0.s8 %v106_v22 }
   0x4   :  { %v605_v3 = vld [vmem:[%s798_s1 + $0x80] sm:$0xff]   ;;  %560 = vmatprep.subr.bf16.mxu1 %v604_v2  ;;  %540 = vmatprep.subr.bf16.mxu0 %v606_v4  ;;  %v609_v7 = vld [vmem:[%s798_s1 + $0x88] sm:$0xff]   ;;  %v613_v11 = vld [vmem:[%s798_s1 + $0x90] sm:$0xff]  }
   0x5   :  { %561 = vmatpush3.bf16.msra.mxu1 %v605_v3  ;;  %v614_v12 = vld [vmem:[%s798_s1 + $0x58] sm:$0xff]   ;;  %v618_v16 = vld [vmem:[%s798_s1 + $0x60] sm:$0xff]   ;;  %v622_v20 = vld [vmem:[%s798_s1 + $0x68] sm:$0xff]   ;;  %v110_v34 = vsub.s32 %v107_v28, %v109_v29 }
   0x6   :  { %562 = vmatprep.subr.bf16.mxu1 %v608_v6  ;;  %v615_v13 = vld [vmem:[%s798_s1 + $0x18] sm:$0xff]   ;;  %v619_v17 = vld [vmem:[%s798_s1 + $0x20] sm:$0xff]   ;;  %v623_v24 = vld [vmem:[%s798_s1 + $0x28] sm:$0xff]  }
   0x7   :  { %541 = vmatpush3.bf16.msra.mxu0 %v607_v5  ;;  %v616_v14 = vld [vmem:[%s798_s1 + $0xd8] sm:$0xff]   ;;  %v620_v18 = vld [vmem:[%s798_s1 + $0xe0] sm:$0xff]   ;;  %v624_v25 = vld [vmem:[%s798_s1 + $0xe8] sm:$0xff]  }
   0x8   :  { %542 = vmatprep.subr.bf16.mxu0 %v610_v8  ;;  %v617_v15 = vld [vmem:[%s798_s1 + $0x98] sm:$0xff]   ;;  %v621_v19 = vld [vmem:[%s798_s1 + $0xa0] sm:$0xff]   ;;  %v625_v26 = vld [vmem:[%s798_s1 + $0xa8] sm:$0xff]  }
   0x9   :  { %563 = vmatpush3.bf16.msra.mxu1 %v609_v7  ;;  %v626_v27 = vld [vmem:[%s798_s1 + $0x70] sm:$0xff]   ;;  %v630_v33 = vld [vmem:[%s798_s1 + $0x78] sm:$0xff]   ;;  %v21_v37 = vld [vmem:[%s799_s0] sm:$0xff] }
   0xa   :  { %564 = vmatprep.subr.bf16.mxu1 %v612_v10  ;;  %v627_v30 = vld [vmem:[%s798_s1 + $0x30] sm:$0xff]   ;;  %v631_v35 = vld [vmem:[%s798_s1 + $0x38] sm:$0xff]   ;;  %v111_v39 = vrot.slane %v21_v37, %v110_v34  ;;  %v104_v41 = vcombine.high %v21_v37, %v21_v37  ;;  %v635_v44 = vld [vmem:[%s798_s1 + $0x100] sm:$0xff]  }
   0xb   :  { %543 = vmatpush3.bf16.msra.mxu0 %v611_v9  ;;  %v628_v31 = vld [vmem:[%s798_s1 + $0xf0] sm:$0xff]   ;;  %v632_v36 = vld [vmem:[%s798_s1 + $0xf8] sm:$0xff]   ;;  %v636_v46 = vld [vmem:[%s798_s1 + $0x108] sm:$0xff]  }
   0xc   :  { %544 = vmatprep.subr.bf16.mxu0 %v614_v12  ;;  %v629_v32 = vld [vmem:[%s798_s1 + $0xb0] sm:$0xff]   ;;  %v633_v38 = vld [vmem:[%s798_s1 + $0xb8] sm:$0xff]   ;;  %v119_v42 = vcombine.high %v111_v39, %v111_v39  ;;  %v118_v43 = vrot.slane %v104_v41, %v110_v34  ;;  %v498_v49 = vld.sshfl [vmem:[%s799_s0 + $0x8] sm:$0x3 pattern:$0x76325410] }
   0xd   :  { %565 = vmatpush3.bf16.msra.mxu1 %v613_v11  ;;  %v637_v47 = vld [vmem:[%s798_s1 + $0x110] sm:$0xff]   ;;  %v638_v48 = vld [vmem:[%s798_s1 + $0x118] sm:$0xff]   ;;  %v497_v51 = vld [vmem:[%s800_s2] ss:$0 sm:$0xff] }
   0xe   :  { %566 = vmatprep.subr.bf16.mxu1 %v616_v14  ;;  %384 = vmatprep.mubr.bf16.mxu0 %v119_v42  ;;  %v120_v45 = vcombine.high %v118_v43, %v118_v43  ;;  %v536_v4 = vld [vmem:[%s801_s3] ss:$0 sm:$0xff] }
   0xf   :  { %545 = vmatpush3.bf16.msra.mxu0 %v615_v13  ;;  %v537_v7 = vld [vmem:[%s802_s4] ss:$0 sm:$0xff] }
  0x10   :  { %546 = vmatprep.subr.bf16.mxu0 %v618_v16  ;;  %424 = vmatprep.mubr.bf16.mxu1 %v120_v45 }
  0x11   :  { %567 = vmatpush3.bf16.msra.mxu1 %v617_v15 }
  0x12   :  { %568 = vmatprep.subr.bf16.mxu1 %v620_v18 }
  0x13   :  { %547 = vmatpush3.bf16.msra.mxu0 %v619_v17 }
  0x14   :  { %548 = vmatprep.subr.bf16.mxu0 %v622_v20 }
  0x15   :  { %569 = vmatpush3.bf16.msra.mxu1 %v621_v19 }
  0x16   :  { %570 = vmatprep.subr.bf16.mxu1 %v624_v25 }
  0x17   :  { %549 = vmatpush3.bf16.msra.mxu0 %v623_v24 }
  0x18   :  { %550 = vmatprep.subr.bf16.mxu0 %v626_v27 }
  0x19   :  { %571 = vmatpush3.bf16.msra.mxu1 %v625_v26 }
  0x1a   :  { %572 = vmatprep.subr.bf16.mxu1 %v628_v31 }
  0x1b   :  { %551 = vmatpush3.bf16.msra.mxu0 %v627_v30 }
  0x1c   :  { %552 = vmatprep.subr.bf16.mxu0 %v630_v33 }
  0x1d   :  { %573 = vmatpush3.bf16.msra.mxu1 %v629_v32 }
  0x1e   :  { %574 = vmatprep.subr.bf16.mxu1 %v632_v36 }
  0x1f   :  { %553 = vmatpush3.bf16.msra.mxu0 %v631_v35 }
  0x20   :  { %587 = vmatprep.subr.bf16.mxu0 %v640_v40 }
  0x21   :  { %575 = vmatpush3.bf16.msra.mxu1 %v633_v38 }
  0x22   :  { %385 = vmatmul.mubr.bf16.vlgmr.msra.gmra.mrb[0].mxu0 %v111_v39 }
  0x23   :  { %588 = vmatpush3.bf16.msra.mxu0 %v635_v44  ;;  %595 = vmatprep.mubr.msk.bf16.mxu0 %vm641_vm0, %v640_v40 }
  0x24   :  { %425 = vmatmul.mubr.bf16.vlgmr.msra.gmra.mrb[0].mxu1 %v118_v43  ;;  %589 = vmatprep.subr.bf16.mxu0 %v640_v40 }
  0x27   :  { %590 = vmatpush3.bf16.msra.mxu0 %v636_v46 }
  0x28   :  { %591 = vmatprep.subr.bf16.mxu0 %v640_v40 }
  0x2b   :  { %592 = vmatpush3.bf16.msra.mxu0 %v637_v47 }
  0x2c   :  { %593 = vmatprep.subr.bf16.mxu0 %v640_v40 }
  0x2f   :  { %594 = vmatpush3.bf16.msra.mxu0 %v638_v48 }
  0x32   :  { %596 = vmatmul.mubr.msk.bf16.vlgmr.msra.gmra.mrb[4].mxu0 %vm348_vm1, %v498_v49 }
  0xf5   :  { %v554_v50 = vpop.f32.mrb[0].mxu0 }
  0xf6   :  { %v555_v52 = vpop.f32.mrb[1].mxu0 }
  0xf7   :  { %v556_v53 = vadd.f32 %v555_v52, %v554_v50  ;;  %v557_v54 = vpop.f32.mrb[2].mxu0  ;;  %v576_v55 = vpop.f32.mrb[0].mxu1 }
  0xf8   :  { %v558_v56 = vpop.f32.mrb[3].mxu0  ;;  %v577_v57 = vpop.f32.mrb[1].mxu1 }
  0xf9   :  { %v387_v58 = vadd.f32 %v556_v53, %v497_v51  ;;  %v578_v59 = vadd.f32 %v577_v57, %v576_v55  ;;  %v579_v60 = vpop.f32.mrb[2].mxu1 }
  0xfa   :  { %v580_v61 = vpop.f32.mrb[3].mxu1 }
  0xfb   :  { %v427_v62 = vadd.f32 %v578_v59, %v387_v58 }
 0x105   :  { %v466_v63 = vpop.f32.mrb[4].mxu0 }
 0x106   :  { %v467_v0 = vadd.f32 %v466_v63, %v427_v62  ;;  %v597_v1 = vpop.f32.mrb[5].mxu0 }
 0x107   :  { %v469_v2 = vpop.f32.mrb[6].mxu0 }
 0x108   :  { %vm472_vm2 = vcmp.gt.f32.partialorder %v467_v0, 0.0  ;;  %v473_v3 = vmul.f32 0.2, %v467_v0  ;;  %v598_v5 = vpop.f32.mrb[7].mxu0 }
 0x10a   :  { %v474_v6 = vsel %vm472_vm2, %v467_v0, %v473_v3 }
 0x10b   :  { %v482_v8 = vmul.f32 %v536_v4, %v474_v6 }
 0x10d   :  { %v490_v9 = vadd.f32 %v537_v7, %v482_v8 }
 0x10f   :  { %v491_v10 = vpack.c.bf16 %v490_v9, %v490_v9 }
 0x111   :  { %492 = vst [vmem:[%s803_s5] sm:$0x3] %v491_v10 }

</bundles_post_ra>
